<compile_context>
chip_gen: v7x
topology: tpu7x:2x2x1
jax: 0.10.0
libtpu: 0.0.40
codegen_flags: <defaults>
</compile_context>

<pallas_src>
import functools

import jax
import jax.numpy as jnp
from jax import lax
from jax.experimental import pallas as pl
from jax.experimental.pallas import tpu as pltpu


def _round_up(x: int, m: int) -> int:
    return (x + m - 1) // m * m


def _device_kind() -> str:
    try:
        return jax.devices()[0].device_kind.lower()
    except Exception:
        return ""


def _default_matmul_dtype():
    """bf16 matmul operands on v6e/v7x (f32 accumulation), f32 elsewhere."""
    kind = _device_kind()
    if any(tag in kind for tag in ("v6", "v7", "tpu7", "7x")):
        return jnp.bfloat16
    return jnp.float32


def _convlstm_kernel(zx_ref, zh_ref, w_ref, b_ref, wci_ref, wcf_ref, wco_ref,
                     c_prev_ref, h_out_ref, c_out_ref, stack_ref,
                     *, ksize, w_flat, activation):
    """Fused conv (stacked-tap single matmul) + ConvLSTM gate math.

    zx_ref     : (Bt, Ci_r, Lz)   padded X, spatially flattened (matmul dtype)
    zh_ref     : (Bt, Co_r, Lz)   padded H_prev, flattened       (matmul dtype)
    w_ref      : (4*Co_r, K*K*(Ci_r+Co_r)) stacked conv weight slab
    b_ref      : (4*Co_r, 1)      conv bias (f32)
    wci/wcf/wco_ref : (Co_r, Lz)  peephole weights (f32, fetched once)
    c_prev_ref : (Bt, Co_r, Lz)   previous cell state (f32)
    h_out_ref, c_out_ref : (Bt, Co_r, Lz) outputs (f32)
    stack_ref  : (K*K*(Ci_r+Co_r), Lz) VMEM scratch for the stacked operand
    """
    act = jnp.tanh if activation == "tanh" else jax.nn.relu
    bt, ci_r, lz = zx_ref.shape
    co_r = zh_ref.shape[1]
    cpp = ci_r + co_r

    w = w_ref[...]                     # weight slab, DMA'd once for all steps
    bias = b_ref[...]                  # (4*Co_r, 1) broadcasts over lanes
    wci = wci_ref[...]
    wcf = wcf_ref[...]
    wco = wco_ref[...]

    for ib in range(bt):               # static unroll over the batch sub-block
        zx = zx_ref[ib]                # (Ci_r, Lz)
        zh = zh_ref[ib]                # (Co_r, Lz)

        # Build the stacked conv operand.  Tap (kh, kw) = lane rotation by
        # off = kh*Wf + kw (XLU, overlaps with MXU/VPU).  The circular
        # wrap-around of pltpu.roll is safe because 2*padding == K-1
        # guarantees q + off < Hp*Wf <= Lz for every VALID output column q;
        # wrapped lanes only land in columns the wrapper strips.
        for kh in range(ksize):
            for kw in range(ksize):
                off = kh * w_flat + kw
                t = kh * ksize + kw
                zx_s = zx if off == 0 else pltpu.roll(zx, shift=lz - off, axis=1)
                zh_s = zh if off == 0 else pltpu.roll(zh, shift=lz - off, axis=1)
                stack_ref[t * cpp:t * cpp + ci_r, :] = zx_s
                stack_ref[t * cpp + ci_r:(t + 1) * cpp, :] = zh_s

        # Single MXU matmul: (4*Co_r, K*K*Cpp) @ (K*K*Cpp, Lz), f32 accumulate.
        conv = jnp.dot(w, stack_ref[...], preferred_element_type=jnp.float32)
        conv = conv + bias

        # torch.chunk(conv_output, 4, dim=1) -> i, f, c, o (sublane-aligned).
        i_conv = conv[0 * co_r:1 * co_r, :]
        f_conv = conv[1 * co_r:2 * co_r, :]
        c_conv = conv[2 * co_r:3 * co_r, :]
        o_conv = conv[3 * co_r:4 * co_r, :]

        c_prev = c_prev_ref[ib]
        input_gate = jax.nn.sigmoid(i_conv + wci * c_prev)
        forget_gate = jax.nn.sigmoid(f_conv + wcf * c_prev)
        c_new = forget_gate * c_prev + input_gate * act(c_conv)
        output_gate = jax.nn.sigmoid(o_conv + wco * c_new)
        h_out_ref[ib] = output_gate * act(c_new)
        c_out_ref[ib] = c_new


def conv_lstm_cell(X, H_prev, C_prev, conv_w, conv_b, W_ci, W_cf, W_co,
                   *, padding, activation="tanh", matmul_dtype=jnp.float32):
    """Pallas ConvLSTMCell forward.  All array args are NCHW / OIHW like torch."""
    B, Cin, H, W = X.shape
    Cout = H_prev.shape[1]
    K = conv_w.shape[-1]
    if 2 * padding != K - 1:
        raise ValueError("ConvLSTMCell requires a size-preserving conv "
                         "(2*padding == kernel_size - 1).")

    f32 = jnp.float32
    mm_dt = jnp.dtype(matmul_dtype)
    ds = mm_dt.itemsize
    align = 8 if ds == 4 else 16       # sublane tile: f32 -> 8, bf16 -> 16

    Wf = W + 2 * padding               # padded row width (lane stride of a row)
    Hp = H + 2 * padding
    Lo = H * Wf                        # valid flat output length
    Lz = _round_up(Hp * Wf, 128)       # 128-aligned flat width used everywhere
    Ci_r = _round_up(Cin, align)
    Co_r = _round_up(Cout, align)
    Cpp = Ci_r + Co_r
    KK = K * K

    # Wrap-around safety of the in-kernel lane rotations (see kernel comment):
    # max valid output index + max tap offset must stay inside the padded row.
    assert (H - 1) * Wf + (W - 1) + (K - 1) * Wf + (K - 1) < Hp * Wf <= Lz

    # ---- conv-input operands: spatial zero-pad, flatten, channel/lane pad ----
    def in_flat(a, c_pad):
        b, c = a.shape[:2]
        ap = jnp.pad(a, ((0, 0), (0, c_pad - c),
                         (padding, padding), (padding, padding)))
        flat = ap.reshape(b, c_pad, Hp * Wf)
        flat = jnp.pad(flat, ((0, 0), (0, 0), (0, Lz - Hp * Wf)))
        return flat.astype(mm_dt)

    zx = in_flat(X, Ci_r)              # (B, Ci_r, Lz)
    zh = in_flat(H_prev, Co_r)         # (B, Co_r, Lz)

    # ---- output-indexed operands (C_prev / peepholes): right-pad width only --
    def out_flat(a):
        pads = [(0, 0)] * (a.ndim - 3) + [(0, Co_r - Cout), (0, 0), (0, Wf - W)]
        ap = jnp.pad(a.astype(f32), pads)
        flat = ap.reshape(*a.shape[:-3], Co_r, Lo)
        flat = jnp.pad(flat, [(0, 0)] * (flat.ndim - 1) + [(0, Lz - Lo)])
        return flat

    wci = out_flat(W_ci)               # (Co_r, Lz), fetched once (no B-tiling)
    wcf = out_flat(W_cf)
    wco = out_flat(W_co)
    c_prev_f = out_flat(C_prev)        # (B, Co_r, Lz)

    # ---- stacked conv weight slab: (4*Co_r, K*K*Cpp), columns ordered as -----
    # (kh, kw, [x-channels padded to Ci_r, h-channels padded to Co_r]) to match
    # the in-kernel stack layout; gate rows padded Cout -> Co_r with zeros.
    w4 = conv_w.astype(f32).reshape(4, Cout, Cin + Cout, K, K)
    w4 = jnp.pad(w4, ((0, 0), (0, Co_r - Cout), (0, 0), (0, 0), (0, 0)))
    wx = jnp.pad(w4[:, :, :Cin], ((0, 0), (0, 0), (0, Ci_r - Cin), (0, 0), (0, 0)))
    wh = jnp.pad(w4[:, :, Cin:], ((0, 0), (0, 0), (0, Co_r - Cout), (0, 0), (0, 0)))
    w_cat = jnp.concatenate([wx, wh], axis=2)            # (4, Co_r, Cpp, K, K)
    w_stack = w_cat.transpose(0, 1, 3, 4, 2).reshape(4 * Co_r, KK * Cpp).astype(mm_dt)

    b_col = jnp.pad(conv_b.astype(f32).reshape(4, Cout),
                    ((0, 0), (0, Co_r - Cout))).reshape(4 * Co_r, 1)

    # ---- per-step batch sub-block (Bt) and VMEM budget -----------------------
    per_elem = (Ci_r + Co_r) * Lz * ds + 3 * Co_r * Lz * 4      # streamed / elem
    const_bytes = (4 * Co_r * KK * Cpp * ds + 4 * Co_r * 4       # weights + bias
                   + 3 * Co_r * Lz * 4                           # peepholes
                   + KK * Cpp * Lz * ds                          # stack scratch
                   + 8 * Co_r * Lz * 4)                          # conv/gate temps
    kind = _device_kind()
    is_v7 = ("v7" in kind) or ("7x" in kind)
    vmem_cap = (40 if is_v7 else 64) * 2 ** 20
    target = 4 * 2 ** 20
    Bt = 1
    for cand in range(1, B + 1):
        if B % cand:
            continue
        if B >= 2 and B // cand < 2:       # keep >=2 "parallel" steps (v7x 2 TCs)
            break
        if const_bytes + 2 * cand * per_elem > vmem_cap:
            break
        Bt = cand
        if cand * per_elem >= target:
            break
    grid = (B // Bt,)
    vmem_limit = int(min(vmem_cap, max(8 * 2 ** 20,
                                       const_bytes + 2 * Bt * per_elem + (2 << 20))))
    # TODO(synk): for very large frame_size on v7x (64 MiB VMEM) add a second
    # grid axis over output-row tiles with a (K-1)-row halo so one block never
    # exceeds the cap; not needed at these shapes.

    cost = pl.CostEstimate(
        flops=int(2 * B * (4 * Co_r) * (KK * Cpp) * Lz + 10 * B * Co_r * Lz),
        transcendentals=int(5 * B * Co_r * Lz),
        bytes_accessed=int(B * (Ci_r + Co_r) * Lz * ds + 3 * B * Co_r * Lz * 4
                           + 4 * Co_r * KK * Cpp * ds + 3 * Co_r * Lz * 4))

    kernel = functools.partial(_convlstm_kernel, ksize=K, w_flat=Wf,
                               activation=activation)

    grid_spec = pltpu.PrefetchScalarGridSpec(
        num_scalar_prefetch=0,
        grid=grid,
        in_specs=[
            pl.BlockSpec((Bt, Ci_r, Lz), lambda b: (b, 0, 0)),      # padded X
            pl.BlockSpec((Bt, Co_r, Lz), lambda b: (b, 0, 0)),      # padded H_prev
            pl.BlockSpec((4 * Co_r, KK * Cpp), lambda b: (0, 0)),   # weight slab
            pl.BlockSpec((4 * Co_r, 1), lambda b: (0, 0)),          # bias
            pl.BlockSpec((Co_r, Lz), lambda b: (0, 0)),             # W_ci
            pl.BlockSpec((Co_r, Lz), lambda b: (0, 0)),             # W_cf
            pl.BlockSpec((Co_r, Lz), lambda b: (0, 0)),             # W_co
            pl.BlockSpec((Bt, Co_r, Lz), lambda b: (b, 0, 0)),      # C_prev
        ],
        out_specs=(pl.BlockSpec((Bt, Co_r, Lz), lambda b: (b, 0, 0)),
                   pl.BlockSpec((Bt, Co_r, Lz), lambda b: (b, 0, 0))),
        scratch_shapes=[pltpu.VMEM((KK * Cpp, Lz), mm_dt)],
    )

    h_flat, c_flat = pl.pallas_call(
        kernel,
        out_shape=(jax.ShapeDtypeStruct((B, Co_r, Lz), f32),
                   jax.ShapeDtypeStruct((B, Co_r, Lz), f32)),
        grid_spec=grid_spec,
        compiler_params=pltpu.CompilerParams(
            dimension_semantics=("parallel",),
            vmem_limit_bytes=vmem_limit),
        cost_estimate=cost,
    )(zx, zh, w_stack, b_col, wci, wcf, wco, c_prev_f)

    # Strip channel-row and width padding; result is already NCHW (no transpose).
    def strip(a):
        return a[:, :Cout, :Lo].reshape(B, Cout, H, Wf)[:, :, :, :W]

    return strip(h_flat), strip(c_flat)


def conv_lstm_cell_ref(X, H_prev, C_prev, conv_w, conv_b, W_ci, W_cf, W_co,
                       *, padding, activation="tanh"):
    """Pure-JAX reference matching the PyTorch module."""
    act = jnp.tanh if activation == "tanh" else jax.nn.relu
    Cout = H_prev.shape[1]
    x = jnp.concatenate([X, H_prev], axis=1)
    conv = lax.conv_general_dilated(
        x, conv_w, window_strides=(1, 1),
        padding=((padding, padding), (padding, padding)),
        dimension_numbers=("NCHW", "OIHW", "NCHW"))
    conv = conv + conv_b.reshape(1, -1, 1, 1)
    i_conv = conv[:, 0 * Cout:1 * Cout]
    f_conv = conv[:, 1 * Cout:2 * Cout]
    c_conv = conv[:, 2 * Cout:3 * Cout]
    o_conv = conv[:, 3 * Cout:4 * Cout]
    input_gate = jax.nn.sigmoid(i_conv + W_ci[None] * C_prev)
    forget_gate = jax.nn.sigmoid(f_conv + W_cf[None] * C_prev)
    C = forget_gate * C_prev + input_gate * act(c_conv)
    output_gate = jax.nn.sigmoid(o_conv + W_co[None] * C)
    Hn = output_gate * act(C)
    return Hn, C


if __name__ == "__main__":
    # Small shapes consistent with the module.
    B, Cin, Cout = 2, 4, 8
    H, W = 16, 16
    K, PAD = 3, 1
    ACT = "tanh"

    key = jax.random.PRNGKey(0)
    ks = jax.random.split(key, 8)
    X = jax.random.normal(ks[0], (B, Cin, H, W), jnp.float32)
    H_prev = jax.random.normal(ks[1], (B, Cout, H, W), jnp.float32)
    C_prev = jax.random.normal(ks[2], (B, Cout, H, W), jnp.float32)

    # Module-shaped parameters (W_c* are zeros-init in torch; small random here
    # to exercise the peephole path).
    conv_w = 0.1 * jax.random.normal(ks[3], (4 * Cout, Cin + Cout, K, K), jnp.float32)
    conv_b = 0.1 * jax.random.normal(ks[4], (4 * Cout,), jnp.float32)
    W_ci = 0.1 * jax.random.normal(ks[5], (Cout, H, W), jnp.float32)
    W_cf = 0.1 * jax.random.normal(ks[6], (Cout, H, W), jnp.float32)
    W_co = 0.1 * jax.random.normal(ks[7], (Cout, H, W), jnp.float32)

    mm_dtype = _default_matmul_dtype()   # bf16 MXU operands on v6e/v7x, else f32
    cell = jax.jit(functools.partial(conv_lstm_cell, padding=PAD, activation=ACT,
                                     matmul_dtype=mm_dtype))
    H_new, C_new = cell(X, H_prev, C_prev, conv_w, conv_b, W_ci, W_cf, W_co)
    jax.block_until_ready((H_new, C_new))

    H_ref, C_ref = conv_lstm_cell_ref(X, H_prev, C_prev, conv_w, conv_b,
                                      W_ci, W_cf, W_co, padding=PAD, activation=ACT)

    # bf16 matmul operands (f32 accumulation / gate math) need a looser tolerance.
    tol = 2e-5 if jnp.dtype(mm_dtype) == jnp.dtype(jnp.float32) else 6e-2
    assert H_new.shape == H_ref.shape and C_new.shape == C_ref.shape
    assert jnp.allclose(H_new, H_ref, atol=tol, rtol=tol), "H mismatch"
    assert jnp.allclose(C_new, C_ref, atol=tol, rtol=tol), "C mismatch"

    print("KERNEL_OK")
</pallas_src>

<mosaic_0001>
module attributes {stable_mosaic.version = 11 : i64} {
  func.func @_convlstm_kernel(%arg0: i32, %arg1: memref<1x8x384xf32, #tpu.memory_space<vmem>>, %arg2: memref<1x8x384xf32, #tpu.memory_space<vmem>>, %arg3: memref<32x144xf32, #tpu.memory_space<vmem>>, %arg4: memref<32x1xf32, #tpu.memory_space<vmem>>, %arg5: memref<8x384xf32, #tpu.memory_space<vmem>>, %arg6: memref<8x384xf32, #tpu.memory_space<vmem>>, %arg7: memref<8x384xf32, #tpu.memory_space<vmem>>, %arg8: memref<1x8x384xf32, #tpu.memory_space<vmem>>, %arg9: memref<1x8x384xf32, #tpu.memory_space<vmem>>, %arg10: memref<1x8x384xf32, #tpu.memory_space<vmem>>, %arg11: memref<144x384xf32, #tpu.memory_space<vmem>>) attributes {dimension_semantics = [#tpu.dimension_semantics<parallel>], iteration_bounds = array<i64: 2>, scalar_prefetch = 0 : i64, scratch_operands = 1 : i64, tpu.core_type = #tpu.core_type<tc>, window_params = [{transform_indices = @transform_0, window_bounds = array<i64: 1, 8, 384>}, {transform_indices = @transform_1, window_bounds = array<i64: 1, 8, 384>}, {pipeline_mode = #tpu.pipeline_mode<synchronous>, transform_indices = @transform_2, window_bounds = array<i64: 32, 144>}, {pipeline_mode = #tpu.pipeline_mode<synchronous>, transform_indices = @transform_3, window_bounds = array<i64: 32, 1>}, {pipeline_mode = #tpu.pipeline_mode<synchronous>, transform_indices = @transform_4, window_bounds = array<i64: 8, 384>}, {pipeline_mode = #tpu.pipeline_mode<synchronous>, transform_indices = @transform_5, window_bounds = array<i64: 8, 384>}, {pipeline_mode = #tpu.pipeline_mode<synchronous>, transform_indices = @transform_6, window_bounds = array<i64: 8, 384>}, {transform_indices = @transform_7, window_bounds = array<i64: 1, 8, 384>}, {transform_indices = @transform_8, window_bounds = array<i64: 1, 8, 384>}, {transform_indices = @transform_9, window_bounds = array<i64: 1, 8, 384>}]} {
    %c0 = arith.constant 0 : index
    %c0_0 = arith.constant 0 : index
    %0 = vector.load %arg3[%c0, %c0_0] : memref<32x144xf32, #tpu.memory_space<vmem>>, vector<32x144xf32>
    %c0_1 = arith.constant 0 : index
    %c0_2 = arith.constant 0 : index
    %1 = vector.load %arg4[%c0_1, %c0_2] : memref<32x1xf32, #tpu.memory_space<vmem>>, vector<32x1xf32>
    %c0_3 = arith.constant 0 : index
    %c0_4 = arith.constant 0 : index
    %2 = vector.load %arg5[%c0_3, %c0_4] : memref<8x384xf32, #tpu.memory_space<vmem>>, vector<8x384xf32>
    %c0_5 = arith.constant 0 : index
    %c0_6 = arith.constant 0 : index
    %3 = vector.load %arg6[%c0_5, %c0_6] : memref<8x384xf32, #tpu.memory_space<vmem>>, vector<8x384xf32>
    %c0_7 = arith.constant 0 : index
    %c0_8 = arith.constant 0 : index
    %4 = vector.load %arg7[%c0_7, %c0_8] : memref<8x384xf32, #tpu.memory_space<vmem>>, vector<8x384xf32>
    %c0_9 = arith.constant 0 : index
    %c0_10 = arith.constant 0 : index
    %c0_11 = arith.constant 0 : index
    %5 = vector.load %arg1[%c0_9, %c0_10, %c0_11] : memref<1x8x384xf32, #tpu.memory_space<vmem>>, vector<1x8x384xf32>
    %6 = vector.shape_cast %5 : vector<1x8x384xf32> to vector<8x384xf32>
    %c0_12 = arith.constant 0 : index
    %c0_13 = arith.constant 0 : index
    %c0_14 = arith.constant 0 : index
    %7 = vector.load %arg2[%c0_12, %c0_13, %c0_14] : memref<1x8x384xf32, #tpu.memory_space<vmem>>, vector<1x8x384xf32>
    %8 = vector.shape_cast %7 : vector<1x8x384xf32> to vector<8x384xf32>
    %c0_15 = arith.constant 0 : index
    %c0_16 = arith.constant 0 : index
    %9 = vector.load %arg11[%c0_15, %c0_16] : memref<144x384xf32, #tpu.memory_space<vmem>>, vector<8x384xf32>
    tpu.vector_store %arg11[%c0_15, %c0_16], %6 {strides = array<i32>} : memref<144x384xf32, #tpu.memory_space<vmem>>, vector<8x384xf32>,
    %c8 = arith.constant 8 : index
    %c0_17 = arith.constant 0 : index
    %10 = vector.load %arg11[%c8, %c0_17] : memref<144x384xf32, #tpu.memory_space<vmem>>, vector<8x384xf32>
    tpu.vector_store %arg11[%c8, %c0_17], %8 {strides = array<i32>} : memref<144x384xf32, #tpu.memory_space<vmem>>, vector<8x384xf32>,
    %c383_i32 = arith.constant 383 : i32
    %11 = tpu.dynamic_rotate %6 by %c383_i32 dim 1 : vector<8x384xf32>, i32 -> vector<8x384xf32>
    %c383_i32_18 = arith.constant 383 : i32
    %12 = tpu.dynamic_rotate %8 by %c383_i32_18 dim 1 : vector<8x384xf32>, i32 -> vector<8x384xf32>
    %c16 = arith.constant 16 : index
    %c0_19 = arith.constant 0 : index
    %13 = vector.load %arg11[%c16, %c0_19] : memref<144x384xf32, #tpu.memory_space<vmem>>, vector<8x384xf32>
    tpu.vector_store %arg11[%c16, %c0_19], %11 {strides = array<i32>} : memref<144x384xf32, #tpu.memory_space<vmem>>, vector<8x384xf32>,
    %c24 = arith.constant 24 : index
    %c0_20 = arith.constant 0 : index
    %14 = vector.load %arg11[%c24, %c0_20] : memref<144x384xf32, #tpu.memory_space<vmem>>, vector<8x384xf32>
    tpu.vector_store %arg11[%c24, %c0_20], %12 {strides = array<i32>} : memref<144x384xf32, #tpu.memory_space<vmem>>, vector<8x384xf32>,
    %c382_i32 = arith.constant 382 : i32
    %15 = tpu.dynamic_rotate %6 by %c382_i32 dim 1 : vector<8x384xf32>, i32 -> vector<8x384xf32>
    %c382_i32_21 = arith.constant 382 : i32
    %16 = tpu.dynamic_rotate %8 by %c382_i32_21 dim 1 : vector<8x384xf32>, i32 -> vector<8x384xf32>
    %c32 = arith.constant 32 : index
    %c0_22 = arith.constant 0 : index
    %17 = vector.load %arg11[%c32, %c0_22] : memref<144x384xf32, #tpu.memory_space<vmem>>, vector<8x384xf32>
    tpu.vector_store %arg11[%c32, %c0_22], %15 {strides = array<i32>} : memref<144x384xf32, #tpu.memory_space<vmem>>, vector<8x384xf32>,
    %c40 = arith.constant 40 : index
    %c0_23 = arith.constant 0 : index
    %18 = vector.load %arg11[%c40, %c0_23] : memref<144x384xf32, #tpu.memory_space<vmem>>, vector<8x384xf32>
    tpu.vector_store %arg11[%c40, %c0_23], %16 {strides = array<i32>} : memref<144x384xf32, #tpu.memory_space<vmem>>, vector<8x384xf32>,
    %c366_i32 = arith.constant 366 : i32
    %19 = tpu.dynamic_rotate %6 by %c366_i32 dim 1 : vector<8x384xf32>, i32 -> vector<8x384xf32>
    %c366_i32_24 = arith.constant 366 : i32
    %20 = tpu.dynamic_rotate %8 by %c366_i32_24 dim 1 : vector<8x384xf32>, i32 -> vector<8x384xf32>
    %c48 = arith.constant 48 : index
    %c0_25 = arith.constant 0 : index
    %21 = vector.load %arg11[%c48, %c0_25] : memref<144x384xf32, #tpu.memory_space<vmem>>, vector<8x384xf32>
    tpu.vector_store %arg11[%c48, %c0_25], %19 {strides = array<i32>} : memref<144x384xf32, #tpu.memory_space<vmem>>, vector<8x384xf32>,
    %c56 = arith.constant 56 : index
    %c0_26 = arith.constant 0 : index
    %22 = vector.load %arg11[%c56, %c0_26] : memref<144x384xf32, #tpu.memory_space<vmem>>, vector<8x384xf32>
    tpu.vector_store %arg11[%c56, %c0_26], %20 {strides = array<i32>} : memref<144x384xf32, #tpu.memory_space<vmem>>, vector<8x384xf32>,
    %c365_i32 = arith.constant 365 : i32
    %23 = tpu.dynamic_rotate %6 by %c365_i32 dim 1 : vector<8x384xf32>, i32 -> vector<8x384xf32>
    %c365_i32_27 = arith.constant 365 : i32
    %24 = tpu.dynamic_rotate %8 by %c365_i32_27 dim 1 : vector<8x384xf32>, i32 -> vector<8x384xf32>
    %c64 = arith.constant 64 : index
    %c0_28 = arith.constant 0 : index
    %25 = vector.load %arg11[%c64, %c0_28] : memref<144x384xf32, #tpu.memory_space<vmem>>, vector<8x384xf32>
    tpu.vector_store %arg11[%c64, %c0_28], %23 {strides = array<i32>} : memref<144x384xf32, #tpu.memory_space<vmem>>, vector<8x384xf32>,
    %c72 = arith.constant 72 : index
    %c0_29 = arith.constant 0 : index
    %26 = vector.load %arg11[%c72, %c0_29] : memref<144x384xf32, #tpu.memory_space<vmem>>, vector<8x384xf32>
    tpu.vector_store %arg11[%c72, %c0_29], %24 {strides = array<i32>} : memref<144x384xf32, #tpu.memory_space<vmem>>, vector<8x384xf32>,
    %c364_i32 = arith.constant 364 : i32
    %27 = tpu.dynamic_rotate %6 by %c364_i32 dim 1 : vector<8x384xf32>, i32 -> vector<8x384xf32>
    %c364_i32_30 = arith.constant 364 : i32
    %28 = tpu.dynamic_rotate %8 by %c364_i32_30 dim 1 : vector<8x384xf32>, i32 -> vector<8x384xf32>
    %c80 = arith.constant 80 : index
    %c0_31 = arith.constant 0 : index
    %29 = vector.load %arg11[%c80, %c0_31] : memref<144x384xf32, #tpu.memory_space<vmem>>, vector<8x384xf32>
    tpu.vector_store %arg11[%c80, %c0_31], %27 {strides = array<i32>} : memref<144x384xf32, #tpu.memory_space<vmem>>, vector<8x384xf32>,
    %c88 = arith.constant 88 : index
    %c0_32 = arith.constant 0 : index
    %30 = vector.load %arg11[%c88, %c0_32] : memref<144x384xf32, #tpu.memory_space<vmem>>, vector<8x384xf32>
    tpu.vector_store %arg11[%c88, %c0_32], %28 {strides = array<i32>} : memref<144x384xf32, #tpu.memory_space<vmem>>, vector<8x384xf32>,
    %c348_i32 = arith.constant 348 : i32
    %31 = tpu.dynamic_rotate %6 by %c348_i32 dim 1 : vector<8x384xf32>, i32 -> vector<8x384xf32>
    %c348_i32_33 = arith.constant 348 : i32
    %32 = tpu.dynamic_rotate %8 by %c348_i32_33 dim 1 : vector<8x384xf32>, i32 -> vector<8x384xf32>
    %c96 = arith.constant 96 : index
    %c0_34 = arith.constant 0 : index
    %33 = vector.load %arg11[%c96, %c0_34] : memref<144x384xf32, #tpu.memory_space<vmem>>, vector<8x384xf32>
    tpu.vector_store %arg11[%c96, %c0_34], %31 {strides = array<i32>} : memref<144x384xf32, #tpu.memory_space<vmem>>, vector<8x384xf32>,
    %c104 = arith.constant 104 : index
    %c0_35 = arith.constant 0 : index
    %34 = vector.load %arg11[%c104, %c0_35] : memref<144x384xf32, #tpu.memory_space<vmem>>, vector<8x384xf32>
    tpu.vector_store %arg11[%c104, %c0_35], %32 {strides = array<i32>} : memref<144x384xf32, #tpu.memory_space<vmem>>, vector<8x384xf32>,
    %c347_i32 = arith.constant 347 : i32
    %35 = tpu.dynamic_rotate %6 by %c347_i32 dim 1 : vector<8x384xf32>, i32 -> vector<8x384xf32>
    %c347_i32_36 = arith.constant 347 : i32
    %36 = tpu.dynamic_rotate %8 by %c347_i32_36 dim 1 : vector<8x384xf32>, i32 -> vector<8x384xf32>
    %c112 = arith.constant 112 : index
    %c0_37 = arith.constant 0 : index
    %37 = vector.load %arg11[%c112, %c0_37] : memref<144x384xf32, #tpu.memory_space<vmem>>, vector<8x384xf32>
    tpu.vector_store %arg11[%c112, %c0_37], %35 {strides = array<i32>} : memref<144x384xf32, #tpu.memory_space<vmem>>, vector<8x384xf32>,
    %c120 = arith.constant 120 : index
    %c0_38 = arith.constant 0 : index
    %38 = vector.load %arg11[%c120, %c0_38] : memref<144x384xf32, #tpu.memory_space<vmem>>, vector<8x384xf32>
    tpu.vector_store %arg11[%c120, %c0_38], %36 {strides = array<i32>} : memref<144x384xf32, #tpu.memory_space<vmem>>, vector<8x384xf32>,
    %c346_i32 = arith.constant 346 : i32
    %39 = tpu.dynamic_rotate %6 by %c346_i32 dim 1 : vector<8x384xf32>, i32 -> vector<8x384xf32>
    %c346_i32_39 = arith.constant 346 : i32
    %40 = tpu.dynamic_rotate %8 by %c346_i32_39 dim 1 : vector<8x384xf32>, i32 -> vector<8x384xf32>
    %c128 = arith.constant 128 : index
    %c0_40 = arith.constant 0 : index
    %41 = vector.load %arg11[%c128, %c0_40] : memref<144x384xf32, #tpu.memory_space<vmem>>, vector<8x384xf32>
    tpu.vector_store %arg11[%c128, %c0_40], %39 {strides = array<i32>} : memref<144x384xf32, #tpu.memory_space<vmem>>, vector<8x384xf32>,
    %c136 = arith.constant 136 : index
    %c0_41 = arith.constant 0 : index
    %42 = vector.load %arg11[%c136, %c0_41] : memref<144x384xf32, #tpu.memory_space<vmem>>, vector<8x384xf32>
    tpu.vector_store %arg11[%c136, %c0_41], %40 {strides = array<i32>} : memref<144x384xf32, #tpu.memory_space<vmem>>, vector<8x384xf32>,
    %c0_42 = arith.constant 0 : index
    %c0_43 = arith.constant 0 : index
    %43 = vector.load %arg11[%c0_42, %c0_43] : memref<144x384xf32, #tpu.memory_space<vmem>>, vector<144x384xf32>
    %cst = arith.constant dense<0.000000e+00> : vector<32x384xf32>
    %44 = tpu.matmul %0, %43, %cst {dimension_numbers = #tpu.dot_dimension_numbers<[1], [0], [0], [1], [0, 0, 1, 1], [], []>} : vector<32x144xf32>, vector<144x384xf32>, vector<32x384xf32> -> vector<32x384xf32>
    %45 = vector.broadcast %1 : vector<32x1xf32> to vector<32x384xf32>
    %46 = arith.addf %44, %45 : vector<32x384xf32>
    %47 = vector.extract_strided_slice %46 {offsets = [0, 0], sizes = [8, 384], strides = [1, 1]} : vector<32x384xf32> to vector<8x384xf32>
    %48 = vector.extract_strided_slice %46 {offsets = [8, 0], sizes = [8, 384], strides = [1, 1]} : vector<32x384xf32> to vector<8x384xf32>
    %49 = vector.extract_strided_slice %46 {offsets = [16, 0], sizes = [8, 384], strides = [1, 1]} : vector<32x384xf32> to vector<8x384xf32>
    %50 = vector.extract_strided_slice %46 {offsets = [24, 0], sizes = [8, 384], strides = [1, 1]} : vector<32x384xf32> to vector<8x384xf32>
    %c0_44 = arith.constant 0 : index
    %c0_45 = arith.constant 0 : index
    %c0_46 = arith.constant 0 : index
    %51 = vector.load %arg8[%c0_44, %c0_45, %c0_46] : memref<1x8x384xf32, #tpu.memory_space<vmem>>, vector<1x8x384xf32>
    %52 = vector.shape_cast %51 : vector<1x8x384xf32> to vector<8x384xf32>
    %53 = arith.mulf %2, %52 : vector<8x384xf32>
    %54 = arith.addf %47, %53 : vector<8x384xf32>
    %55 = arith.negf %54 : vector<8x384xf32>
    %56 = math.exp %55 : vector<8x384xf32>
    %cst_47 = arith.constant 1.000000e+00 : f32
    %57 = vector.broadcast %cst_47 : f32 to vector<8x384xf32>
    %58 = arith.addf %57, %56 : vector<8x384xf32>
    %59 = arith.divf %57, %58 : vector<8x384xf32>
    %60 = arith.mulf %3, %52 : vector<8x384xf32>
    %61 = arith.addf %48, %60 : vector<8x384xf32>
    %62 = arith.negf %61 : vector<8x384xf32>
    %63 = math.exp %62 : vector<8x384xf32>
    %cst_48 = arith.constant 1.000000e+00 : f32
    %64 = vector.broadcast %cst_48 : f32 to vector<8x384xf32>
    %65 = arith.addf %64, %63 : vector<8x384xf32>
    %66 = arith.divf %64, %65 : vector<8x384xf32>
    %67 = arith.mulf %66, %52 : vector<8x384xf32>
    %68 = math.tanh %49 : vector<8x384xf32>
    %69 = arith.mulf %59, %68 : vector<8x384xf32>
    %70 = arith.addf %67, %69 : vector<8x384xf32>
    %71 = arith.mulf %4, %70 : vector<8x384xf32>
    %72 = arith.addf %50, %71 : vector<8x384xf32>
    %73 = arith.negf %72 : vector<8x384xf32>
    %74 = math.exp %73 : vector<8x384xf32>
    %cst_49 = arith.constant 1.000000e+00 : f32
    %75 = vector.broadcast %cst_49 : f32 to vector<8x384xf32>
    %76 = arith.addf %75, %74 : vector<8x384xf32>
    %77 = arith.divf %75, %76 : vector<8x384xf32>
    %78 = math.tanh %70 : vector<8x384xf32>
    %79 = arith.mulf %77, %78 : vector<8x384xf32>
    %c0_50 = arith.constant 0 : index
    %c0_51 = arith.constant 0 : index
    %c0_52 = arith.constant 0 : index
    %80 = vector.load %arg9[%c0_50, %c0_51, %c0_52] : memref<1x8x384xf32, #tpu.memory_space<vmem>>, vector<1x8x384xf32>
    %81 = vector.shape_cast %80 : vector<1x8x384xf32> to vector<8x384xf32>
    %82 = vector.shape_cast %79 : vector<8x384xf32> to vector<1x8x384xf32>
    tpu.vector_store %arg9[%c0_50, %c0_51, %c0_52], %82 {strides = array<i32>} : memref<1x8x384xf32, #tpu.memory_space<vmem>>, vector<1x8x384xf32>,
    %c0_53 = arith.constant 0 : index
    %c0_54 = arith.constant 0 : index
    %c0_55 = arith.constant 0 : index
    %83 = vector.load %arg10[%c0_53, %c0_54, %c0_55] : memref<1x8x384xf32, #tpu.memory_space<vmem>>, vector<1x8x384xf32>
    %84 = vector.shape_cast %83 : vector<1x8x384xf32> to vector<8x384xf32>
    %85 = vector.shape_cast %70 : vector<8x384xf32> to vector<1x8x384xf32>
    tpu.vector_store %arg10[%c0_53, %c0_54, %c0_55], %85 {strides = array<i32>} : memref<1x8x384xf32, #tpu.memory_space<vmem>>, vector<1x8x384xf32>,
    return
  }
  func.func @transform_0(%arg0: i32) -> (i32, i32, i32) {
    %c0_i32 = arith.constant 0 : i32
    %c0_i32_0 = arith.constant 0 : i32
    %c0_i32_1 = arith.constant 0 : i32
    return %arg0, %c0_i32, %c0_i32_0 : i32, i32, i32
  }
  func.func @transform_1(%arg0: i32) -> (i32, i32, i32) {
    %c0_i32 = arith.constant 0 : i32
    %c0_i32_0 = arith.constant 0 : i32
    %c0_i32_1 = arith.constant 0 : i32
    return %arg0, %c0_i32, %c0_i32_0 : i32, i32, i32
  }
  func.func @transform_2(%arg0: i32) -> (i32, i32) {
    %c0_i32 = arith.constant 0 : i32
    %c0_i32_0 = arith.constant 0 : i32
    %c0_i32_1 = arith.constant 0 : i32
    return %c0_i32, %c0_i32_0 : i32, i32
  }
  func.func @transform_3(%arg0: i32) -> (i32, i32) {
    %c0_i32 = arith.constant 0 : i32
    %c0_i32_0 = arith.constant 0 : i32
    %c0_i32_1 = arith.constant 0 : i32
    return %c0_i32, %c0_i32_0 : i32, i32
  }
  func.func @transform_4(%arg0: i32) -> (i32, i32) {
    %c0_i32 = arith.constant 0 : i32
    %c0_i32_0 = arith.constant 0 : i32
    %c0_i32_1 = arith.constant 0 : i32
    return %c0_i32, %c0_i32_0 : i32, i32
  }
  func.func @transform_5(%arg0: i32) -> (i32, i32) {
    %c0_i32 = arith.constant 0 : i32
    %c0_i32_0 = arith.constant 0 : i32
    %c0_i32_1 = arith.constant 0 : i32
    return %c0_i32, %c0_i32_0 : i32, i32
  }
  func.func @transform_6(%arg0: i32) -> (i32, i32) {
    %c0_i32 = arith.constant 0 : i32
    %c0_i32_0 = arith.constant 0 : i32
    %c0_i32_1 = arith.constant 0 : i32
    return %c0_i32, %c0_i32_0 : i32, i32
  }
  func.func @transform_7(%arg0: i32) -> (i32, i32, i32) {
    %c0_i32 = arith.constant 0 : i32
    %c0_i32_0 = arith.constant 0 : i32
    %c0_i32_1 = arith.constant 0 : i32
    return %arg0, %c0_i32, %c0_i32_0 : i32, i32, i32
  }
  func.func @transform_8(%arg0: i32) -> (i32, i32, i32) {
    %c0_i32 = arith.constant 0 : i32
    %c0_i32_0 = arith.constant 0 : i32
    %c0_i32_1 = arith.constant 0 : i32
    return %arg0, %c0_i32, %c0_i32_0 : i32, i32, i32
  }
  func.func @transform_9(%arg0: i32) -> (i32, i32, i32) {
    %c0_i32 = arith.constant 0 : i32
    %c0_i32_0 = arith.constant 0 : i32
    %c0_i32_1 = arith.constant 0 : i32
    return %arg0, %c0_i32, %c0_i32_0 : i32, i32, i32
  }
}

</mosaic_0001>

<bundles_post_ra>
// kernel: conv_lstm_cell.1
= control target key start
LH: loop header
LB: loop body
LE: loop exit
PB: predicated region body
PF: predicated region fallthrough
CT: control target
= control target key end

     0   :  { %s1442_s30 = smov 0   ;;  %s1664_s0 = inlined_call_operand.vmem [shape: f32[2,8,384], index: 0, kind: input, shape index: {}]   ;;  %s1665_s1 = inlined_call_operand.vmem [shape: f32[2,8,384], index: 1, kind: input, shape index: {}]   ;;  %s1666_s2 = inlined_call_operand.vmem [shape: f32[32,144], index: 2, kind: input, shape index: {}]   ;;  %s1667_s3 = inlined_call_operand.vmem [shape: f32[32,1], index: 3, kind: input, shape index: {}]   ;;  %s1668_s4 = inlined_call_operand.vmem [shape: f32[8,384], index: 4, kind: input, shape index: {}]   ;;  %s1669_s5 = inlined_call_operand.vmem [shape: f32[8,384], index: 5, kind: input, shape index: {}]   ;;  %s1670_s6 = inlined_call_operand.vmem [shape: f32[8,384], index: 6, kind: input, shape index: {}]   ;;  %s1671_s7 = inlined_call_operand.vmem [shape: f32[2,8,384], index: 7, kind: input, shape index: {}]   ;;  %s1672_s8 = inlined_call_operand.vmem [shape: f32[2,8,384], index: 8, kind: output, shape index: {0}]   ;;  %s1673_s9 = inlined_call_operand.vmem [shape: f32[2,8,384], index: 9, kind: output, shape index: {1}]  }
   0x1 LB: > { %s1093_s10 = sadd.s32 4294967295, %s1380_s30   ;;  %p1097_p0 = scmp.ge.s32.totalorder %s1380_s30, 1  ;;  %s1380_s30 = sphi %s1442_s30, %s20_s30  }
   0x2   : > { %p310_p1 = scmp.lt.s32.totalorder %s1380_s30, 3 }
   0x4   : > { %p311_p2 = pnand %p1097_p0, %p310_p1 }
   0x5   : > { %p361_p3 = scmp.lt.s32.totalorder (!%p311_p2), %s1093_s10, 1  ;;  %v1382_v0 = vmov (!%p311_p2), 0.0|0.0   ;;  %s1383_s18 = smov (!%p311_p2), 127   ;;  %v387_v13 = vld [vmem:[%s1666_s2 + $0x8] sm:$0xff] (!%p311_p2)  ;;  %vm695_vm0 = vcmask (!%p311_p2), 130048   ;;  %v394_v14 = vld [vmem:[%s1667_s3] sm:$0xff] (!%p311_p2)  ;;  %v425_v19 = vlaneseq (!%p311_p2) }
   0x6   : > { %314 = sbr.rel (%p311_p2) target bundleno = 473 (0x1d9), region = 52  ;;  %1158 = vmatprep.subr.bf16.mxu1 (!%p311_p2), %v1382_v0  ;;  %s1384_s19 = smov (!%p311_p2), 126   ;;  %1107 = vmatprep.mubr.msk.f32.mxu1 (!%p311_p2), %vm695_vm0, %v387_v13  ;;  %v395_v15 = vld [vmem:[%s1667_s3 + $0x8] sm:$0xff] (!%p311_p2)  ;;  %v1391_v16 = vmov (!%p311_p2), 0   ;;  %v397_v17 = vld [vmem:[%s1667_s3 + $0x18] sm:$0xff] (!%p311_p2)  ;;  %v396_v18 = vld [vmem:[%s1667_s3 + $0x10] sm:$0xff] (!%p311_p2) }
   0x7   : > { %s1385_s20 = smov (!%p311_p2), 110   ;;  %s1386_s21 = smov (!%p311_p2), 109   ;;  %1103 = vmatprep.mubr.msk.f32.mxu0 (!%p311_p2), %vm695_vm0, %v387_v13  ;;  %1324 = vset.pattern.permute.xlu0 (!%p311_p2), %v1391_v16  ;;  %v1479_v20 = vand.u32 (!%p311_p2), 127, %v425_v19 }
   0x8   : > { %s1387_s22 = smov (!%p311_p2), 108   ;;  %s1388_s23 = smov (!%p311_p2), 92   ;;  %1325 = vset.pattern.permute.xlu1 (!%p311_p2), %v1391_v16 }
   0x9   : > { %s1389_s24 = smov (!%p311_p2), 91   ;;  %s1390_s27 = smov (!%p311_p2), 90   ;;  %vm427_vm1 = vcmp.lt.s32.totalorder (!%p311_p2), %v1479_v20, 127  ;;  %vm452_vm2 = vcmp.lt.s32.totalorder (!%p311_p2), %v1479_v20, 126  ;;  %vm477_vm3 = vcmp.lt.s32.totalorder (!%p311_p2), %v1479_v20, 110  ;;  %vm502_vm4 = vcmp.lt.s32.totalorder (!%p311_p2), %v1479_v20, 109 }
   0xa   : > { %vm527_vm5 = vcmp.lt.s32.totalorder (!%p311_p2), %v1479_v20, 108  ;;  %vm552_vm6 = vcmp.lt.s32.totalorder (!%p311_p2), %v1479_v20, 92  ;;  %vm577_vm7 = vcmp.lt.s32.totalorder (!%p311_p2), %v1479_v20, 91  ;;  %vm602_vm8 = vcmp.lt.s32.totalorder (!%p311_p2), %v1479_v20, 90  ;;  %v388_v20 = vld [vmem:[%s1666_s2 + $0x10] sm:$0xff] (!%p311_p2) }
   0xd   : > { %s1675_s10 = smov (!%p361_p3, %s1093_s10), 1 }
   0xe   : > { %s1451_s11 = smul.u32 24, %s1675_s10 }
  0x10   : > { %s365_s14 = scalar_lea.vmem %s1664_s0, %s1451_s11  ;;  %s370_s17 = scalar_lea.vmem %s1665_s1, %s1451_s11 }
  0x11   : > { %v408_v1 = vld [vmem:[%s365_s14 + $0x8] sm:$0xff]  ;;  %v409_v2 = vld [vmem:[%s365_s14 + $0x10] sm:$0xff]  ;;  %v407_v3 = vld [vmem:[%s365_s14] sm:$0xff]  ;;  %s375_s14 = scalar_lea.vmem %s1671_s7, %s1451_s11  ;;  %s385_s29 = scalar_lea.vmem %s1673_s9, %s1451_s11 }
  0x12   : > { %v1204_v4 = vpack.i.bf16 %v409_v2, %v408_v1  ;;  %v410_v5 = vld [vmem:[%s370_s17] sm:$0xff]  ;;  %v411_v6 = vld [vmem:[%s370_s17 + $0x8] sm:$0xff]  ;;  %v412_v7 = vld [vmem:[%s370_s17 + $0x10] sm:$0xff] }
  0x13   : > { %v1214_v8 = vpack.i.bf16 %v410_v5, %v407_v3  ;;  %v1209_v9 = vpack.i.bf16 %v412_v7, %v411_v6  ;;  %v1122_v10 = vpack.c.bf16 %v411_v6, %v408_v1  ;;  %v1159_v11 = vpack.c.bf16 %v412_v7, %v409_v2 }
  0x14   : > { %1205 = vrot.lane.b32.xlu0 %v1204_v4, %s1383_s18  ;;  %v1124_v12 = vpack.c.bf16 %v410_v5, %v407_v3 }
  0x15   : > { %1215 = vrot.lane.b32.xlu1 %v1214_v8, %s1383_s18  ;;  %1123 = vmatprep.subr.bf16.mxu0 %v1122_v10 }
  0x16   : > { %1160 = vmatpush1.bf16.msra.mxu1 %v1159_v11  ;;  %1125 = vmatpush1.bf16.msra.mxu0 %v1124_v12 }
  0x17   : > { %1161 = vmatprep.subr.bf16.mxu1 %v1382_v0 }
  0x18   : > { %1210 = vrot.lane.b32.xlu0 %v1209_v9, %s1383_s18 }
  0x19   : > { %1220 = vrot.lane.b32.xlu1 %v1204_v4, %s1384_s19 }
  0x1c   : > { %1225 = vrot.lane.b32.xlu0 %v1209_v9, %s1384_s19 }
  0x1d   : > { %1230 = vrot.lane.b32.xlu1 %v1214_v8, %s1384_s19  ;;  %s380_s19 = scalar_lea.vmem %s1672_s8, %s1451_s11 }
  0x20   : > { %1235 = vrot.lane.b32.xlu0 %v1204_v4, %s1385_s20 }
  0x21   : > { %1240 = vrot.lane.b32.xlu1 %v1209_v9, %s1385_s20 }
  0x24   : > { %1245 = vrot.lane.b32.xlu0 %v1214_v8, %s1385_s20 }
  0x25   : > { %1250 = vrot.lane.b32.xlu1 %v1204_v4, %s1386_s21 }
  0x28   : > { %1255 = vrot.lane.b32.xlu0 %v1209_v9, %s1386_s21 }
  0x29   : > { %1260 = vrot.lane.b32.xlu1 %v1214_v8, %s1386_s21 }
  0x2c   : > { %1265 = vrot.lane.b32.xlu0 %v1204_v4, %s1387_s22 }
  0x2d   : > { %1270 = vrot.lane.b32.xlu1 %v1209_v9, %s1387_s22 }
  0x30   : > { %1275 = vrot.lane.b32.xlu0 %v1214_v8, %s1387_s22 }
  0x31   : > { %1280 = vrot.lane.b32.xlu1 %v1204_v4, %s1388_s23 }
  0x34   : > { %1285 = vrot.lane.b32.xlu0 %v1209_v9, %s1388_s23 }
  0x35   : > { %1290 = vrot.lane.b32.xlu1 %v1214_v8, %s1388_s23 }
  0x38   : > { %1295 = vrot.lane.b32.xlu0 %v1204_v4, %s1389_s24 }
  0x39   : > { %1300 = vrot.lane.b32.xlu1 %v1209_v9, %s1389_s24 }
  0x3c   : > { %1305 = vrot.lane.b32.xlu0 %v1214_v8, %s1389_s24 }
  0x3d   : > { %1310 = vrot.lane.b32.xlu1 %v1204_v4, %s1390_s27 }
  0x40   : > { %1315 = vrot.lane.b32.xlu0 %v1209_v9, %s1390_s27 }
  0x41   : > { %1320 = vrot.lane.b32.xlu1 %v1214_v8, %s1390_s27 }
  0x44   : > { %677 = vperm.xlu0 %1324, %v394_v14  }
  0x45   : > { %682 = vperm.xlu1 %1325, %v395_v15  }
  0x48   : > { %692 = vperm.xlu0 %1324, %v397_v17  }
  0x49   : > { %687 = vperm.xlu1 %1325, %v396_v18  }
  0x86   : > { %v1206_v21 = vpop.permute.xlu0 %1205 }
  0x87   : > { %v1216_v22 = vpop.permute.xlu1 %1215  ;;  %v1208_v23 = vunpack.i.h.bf16 %v1206_v21  ;;  %v1207_v24 = vunpack.i.l.bf16 %v1206_v21 }
  0x88   : > { %v1217_v25 = vunpack.i.l.bf16 %v1216_v22  ;;  %v1218_v27 = vunpack.i.h.bf16 %v1216_v22 }
  0x89   : > { %v428_v32 = vsel %vm427_vm1, %v1207_v24, %v1208_v23 }
  0x8a   : > { %v1211_v26 = vpop.permute.xlu0 %1210  ;;  %v430_v33 = vsel %vm427_vm1, %v1208_v23, %v1217_v25  ;;  %v429_v34 = vsel %vm427_vm1, %v1217_v25, %v1207_v24 }
  0x8b   : > { %v1213_v28 = vunpack.i.h.bf16 %v1211_v26  ;;  %v1212_v29 = vunpack.i.l.bf16 %v1211_v26  ;;  %v1221_v30 = vpop.permute.xlu1 %1220 }
  0x8c   : > { %v1223_v31 = vunpack.i.h.bf16 %v1221_v30  ;;  %v1222_v35 = vunpack.i.l.bf16 %v1221_v30 }
  0x8d   : > { %v437_v36 = vsel %vm427_vm1, %v1212_v29, %v1213_v28  ;;  %v439_v37 = vsel %vm427_vm1, %v1213_v28, %v1218_v27  ;;  %v438_v38 = vsel %vm427_vm1, %v1218_v27, %v1212_v29 }
  0x8e   : > { %v1226_v39 = vpop.permute.xlu0 %1225  ;;  %v1126_v40 = vpack.c.bf16 %v437_v36, %v428_v32  ;;  %v1162_v41 = vpack.c.bf16 %v439_v37, %v430_v33  ;;  %v1128_v42 = vpack.c.bf16 %v438_v38, %v429_v34  ;;  %v453_v48 = vsel %vm452_vm2, %v1222_v35, %v1223_v31 }
  0x8f   : > { %v1228_v43 = vunpack.i.h.bf16 %v1226_v39  ;;  %v1227_v44 = vunpack.i.l.bf16 %v1226_v39  ;;  %v1231_v45 = vpop.permute.xlu1 %1230 }
  0x90   : > { %v1233_v46 = vunpack.i.h.bf16 %v1231_v45  ;;  %v1232_v47 = vunpack.i.l.bf16 %v1231_v45  ;;  %1127 = vmatprep.subr.bf16.mxu0 %v1126_v40  ;;  %1163 = vmatpush1.bf16.msra.mxu1 %v1162_v41 }
  0x91   : > { %1129 = vmatpush1.bf16.msra.mxu0 %v1128_v42  ;;  %1164 = vmatprep.subr.bf16.mxu1 %v1382_v0  ;;  %v462_v49 = vsel %vm452_vm2, %v1227_v44, %v1228_v43 }
  0x92   : > { %v1236_v50 = vpop.permute.xlu0 %1235  ;;  %v1130_v51 = vpack.c.bf16 %v462_v49, %v453_v48  ;;  %v455_v52 = vsel %vm452_vm2, %v1223_v31, %v1232_v47  ;;  %v464_v53 = vsel %vm452_vm2, %v1228_v43, %v1233_v46  ;;  %v454_v54 = vsel %vm452_vm2, %v1232_v47, %v1222_v35 }
  0x93   : > { %v1238_v55 = vunpack.i.h.bf16 %v1236_v50  ;;  %v1237_v56 = vunpack.i.l.bf16 %v1236_v50  ;;  %v1241_v57 = vpop.permute.xlu1 %1240  ;;  %v1165_v58 = vpack.c.bf16 %v464_v53, %v455_v52  ;;  %v463_v59 = vsel %vm452_vm2, %v1233_v46, %v1227_v44 }
  0x94   : > { %v1243_v60 = vunpack.i.h.bf16 %v1241_v57  ;;  %v1242_v61 = vunpack.i.l.bf16 %v1241_v57  ;;  %1131 = vmatprep.subr.bf16.mxu0 %v1130_v51  ;;  %v1132_v62 = vpack.c.bf16 %v463_v59, %v454_v54 }
  0x95   : > { %1166 = vmatpush1.bf16.msra.mxu1 %v1165_v58  ;;  %v478_v63 = vsel %vm477_vm3, %v1237_v56, %v1238_v55 }
  0x96   : > { %1133 = vmatpush1.bf16.msra.mxu0 %v1132_v62  ;;  %v1246_v1 = vpop.permute.xlu0 %1245  ;;  %v487_v2 = vsel %vm477_vm3, %v1242_v61, %v1243_v60  ;;  %1167 = vmatprep.subr.bf16.mxu1 %v1382_v0 }
  0x97   : > { %v1248_v3 = vunpack.i.h.bf16 %v1246_v1  ;;  %v1247_v4 = vunpack.i.l.bf16 %v1246_v1  ;;  %v1251_v5 = vpop.permute.xlu1 %1250  ;;  %v1134_v6 = vpack.c.bf16 %v487_v2, %v478_v63 }
  0x98   : > { %v1253_v7 = vunpack.i.h.bf16 %v1251_v5  ;;  %v1252_v8 = vunpack.i.l.bf16 %v1251_v5 }
  0x99   : > { %1135 = vmatprep.subr.bf16.mxu0 %v1134_v6  ;;  %v479_v9 = vsel %vm477_vm3, %v1247_v4, %v1237_v56  ;;  %v488_v10 = vsel %vm477_vm3, %v1248_v3, %v1242_v61  ;;  %v480_v11 = vsel %vm477_vm3, %v1238_v55, %v1247_v4  ;;  %v489_v12 = vsel %vm477_vm3, %v1243_v60, %v1248_v3 }
  0x9a   : > { %v1256_v13 = vpop.permute.xlu0 %1255  ;;  %v1136_v14 = vpack.c.bf16 %v488_v10, %v479_v9  ;;  %v1168_v15 = vpack.c.bf16 %v489_v12, %v480_v11  ;;  %v503_v22 = vsel %vm502_vm4, %v1252_v8, %v1253_v7 }
  0x9b   : > { %v1258_v16 = vunpack.i.h.bf16 %v1256_v13  ;;  %v1257_v17 = vunpack.i.l.bf16 %v1256_v13  ;;  %v1261_v18 = vpop.permute.xlu1 %1260 }
  0x9c   : > { %v1263_v19 = vunpack.i.h.bf16 %v1261_v18  ;;  %v1262_v21 = vunpack.i.l.bf16 %v1261_v18  ;;  %1137 = vmatpush1.bf16.msra.mxu0 %v1136_v14  ;;  %1169 = vmatpush1.bf16.msra.mxu1 %v1168_v15 }
  0x9d   : > { %1170 = vmatprep.subr.bf16.mxu1 %v1382_v0  ;;  %v512_v23 = vsel %vm502_vm4, %v1257_v17, %v1258_v16 }
  0x9e   : > { %v1266_v24 = vpop.permute.xlu0 %1265  ;;  %v1138_v25 = vpack.c.bf16 %v512_v23, %v503_v22  ;;  %v505_v26 = vsel %vm502_vm4, %v1253_v7, %v1262_v21  ;;  %v514_v27 = vsel %vm502_vm4, %v1258_v16, %v1263_v19  ;;  %v504_v28 = vsel %vm502_vm4, %v1262_v21, %v1252_v8 }
  0x9f   : > { %v1268_v29 = vunpack.i.h.bf16 %v1266_v24  ;;  %v1267_v30 = vunpack.i.l.bf16 %v1266_v24  ;;  %v1271_v31 = vpop.permute.xlu1 %1270  ;;  %v1171_v32 = vpack.c.bf16 %v514_v27, %v505_v26  ;;  %v513_v33 = vsel %vm502_vm4, %v1263_v19, %v1257_v17 }
  0xa0   : > { %v1273_v34 = vunpack.i.h.bf16 %v1271_v31  ;;  %v1272_v35 = vunpack.i.l.bf16 %v1271_v31  ;;  %1139 = vmatprep.subr.bf16.mxu0 %v1138_v25  ;;  %v1140_v36 = vpack.c.bf16 %v513_v33, %v504_v28 }
  0xa1   : > { %1172 = vmatpush1.bf16.msra.mxu1 %v1171_v32  ;;  %v528_v37 = vsel %vm527_vm5, %v1267_v30, %v1268_v29 }
  0xa2   : > { %1141 = vmatpush1.bf16.msra.mxu0 %v1140_v36  ;;  %v1276_v38 = vpop.permute.xlu0 %1275  ;;  %v537_v39 = vsel %vm527_vm5, %v1272_v35, %v1273_v34  ;;  %1173 = vmatprep.subr.bf16.mxu1 %v1382_v0 }
  0xa3   : > { %v1278_v40 = vunpack.i.h.bf16 %v1276_v38  ;;  %v1277_v41 = vunpack.i.l.bf16 %v1276_v38  ;;  %v1281_v42 = vpop.permute.xlu1 %1280  ;;  %v1142_v43 = vpack.c.bf16 %v537_v39, %v528_v37 }
  0xa4   : > { %v1283_v44 = vunpack.i.h.bf16 %v1281_v42  ;;  %v1282_v45 = vunpack.i.l.bf16 %v1281_v42  ;;  %v391_v42 = vld [vmem:[%s1666_s2 + $0x28] sm:$0xff] }
  0xa5   : > { %1143 = vmatprep.subr.bf16.mxu0 %v1142_v43  ;;  %v529_v46 = vsel %vm527_vm5, %v1277_v41, %v1267_v30  ;;  %v538_v47 = vsel %vm527_vm5, %v1278_v40, %v1272_v35  ;;  %v530_v48 = vsel %vm527_vm5, %v1268_v29, %v1277_v41  ;;  %v539_v49 = vsel %vm527_vm5, %v1273_v34, %v1278_v40  ;;  %v386_v40 = vld [vmem:[%s1666_s2] sm:$0xff]  ;;  %v389_v41 = vld [vmem:[%s1666_s2 + $0x18] sm:$0xff] }
  0xa6   : > { %v1286_v50 = vpop.permute.xlu0 %1285  ;;  %v1144_v51 = vpack.c.bf16 %v538_v47, %v529_v46  ;;  %v1174_v52 = vpack.c.bf16 %v539_v49, %v530_v48  ;;  %v553_v58 = vsel %vm552_vm6, %v1282_v45, %v1283_v44  ;;  %v390_v43 = vld [vmem:[%s1666_s2 + $0x20] sm:$0xff]  ;;  %v400_v46 = vld [vmem:[%s1668_s4 + $0x10] sm:$0xff] }
  0xa7   : > { %v1288_v53 = vunpack.i.h.bf16 %v1286_v50  ;;  %v1287_v54 = vunpack.i.l.bf16 %v1286_v50  ;;  %v1291_v55 = vpop.permute.xlu1 %1290  ;;  %v1614_v47 = vld [vmem:[%s375_s14 + $0x10] sm:$0xff]  ;;  %v398_v48 = vld [vmem:[%s1668_s4] sm:$0xff] }
  0xa8   : > { %v1293_v56 = vunpack.i.h.bf16 %v1291_v55  ;;  %v1292_v57 = vunpack.i.l.bf16 %v1291_v55  ;;  %1145 = vmatpush1.bf16.msra.mxu0 %v1144_v51  ;;  %1175 = vmatpush1.bf16.msra.mxu1 %v1174_v52  ;;  %v1619_v49 = vld [vmem:[%s375_s14] sm:$0xff]  ;;  %v399_v51 = vld [vmem:[%s1668_s4 + $0x8] sm:$0xff] }
  0xa9   : > { %1176 = vmatprep.subr.bf16.mxu1 %v1382_v0  ;;  %v562_v59 = vsel %vm552_vm6, %v1287_v54, %v1288_v53  ;;  %v1624_v52 = vld [vmem:[%s375_s14 + $0x8] sm:$0xff]  ;;  %v885_v55 = vmul.f32 %v1619_v49, %v398_v48 }
  0xaa   : > { %v1296_v60 = vpop.permute.xlu0 %1295  ;;  %v1146_v61 = vpack.c.bf16 %v562_v59, %v553_v58  ;;  %v555_v62 = vsel %vm552_vm6, %v1283_v44, %v1292_v57  ;;  %v564_v63 = vsel %vm552_vm6, %v1288_v53, %v1293_v56  ;;  %v554_v1 = vsel %vm552_vm6, %v1292_v57, %v1282_v45  ;;  %v393_v44 = vld [vmem:[%s1666_s2 + $0x38] sm:$0xff]  ;;  %v392_v45 = vld [vmem:[%s1666_s2 + $0x30] sm:$0xff] }
  0xab   : > { %v1298_v2 = vunpack.i.h.bf16 %v1296_v60  ;;  %v1297_v3 = vunpack.i.l.bf16 %v1296_v60  ;;  %v1301_v4 = vpop.permute.xlu1 %1300  ;;  %v1177_v5 = vpack.c.bf16 %v564_v63, %v555_v62  ;;  %v563_v6 = vsel %vm552_vm6, %v1293_v56, %v1287_v54  ;;  %v403_v56 = vld [vmem:[%s1669_s5 + $0x10] sm:$0xff] }
  0xac   : > { %v1303_v7 = vunpack.i.h.bf16 %v1301_v4  ;;  %v1302_v8 = vunpack.i.l.bf16 %v1301_v4  ;;  %1147 = vmatprep.subr.bf16.mxu0 %v1146_v61  ;;  %v1148_v9 = vpack.c.bf16 %v563_v6, %v554_v1  ;;  %v887_v53 = vmul.f32 %v1614_v47, %v400_v46  ;;  %v401_v61 = vld [vmem:[%s1669_s5] sm:$0xff]  ;;  %v402_v1 = vld [vmem:[%s1669_s5 + $0x8] sm:$0xff] }
  0xad   : > { %1178 = vmatpush1.bf16.msra.mxu1 %v1177_v5  ;;  %v578_v10 = vsel %vm577_vm7, %v1297_v3, %v1298_v2  ;;  %v886_v59 = vmul.f32 %v1624_v52, %v399_v51  ;;  %v911_v4 = vmul.f32 %v1614_v47, %v403_v56 }
  0xae   : > { %1149 = vmatpush1.bf16.msra.mxu0 %v1148_v9  ;;  %v1306_v11 = vpop.permute.xlu0 %1305  ;;  %v587_v12 = vsel %vm577_vm7, %v1302_v8, %v1303_v7  ;;  %1179 = vmatprep.subr.bf16.mxu1 %v1382_v0 }
  0xaf   : > { %v1308_v13 = vunpack.i.h.bf16 %v1306_v11  ;;  %v1307_v14 = vunpack.i.l.bf16 %v1306_v11  ;;  %v1311_v15 = vpop.permute.xlu1 %1310  ;;  %v1150_v16 = vpack.c.bf16 %v587_v12, %v578_v10 }
  0xb0   : > { %v1313_v17 = vunpack.i.h.bf16 %v1311_v15  ;;  %v1312_v18 = vunpack.i.l.bf16 %v1311_v15 }
  0xb1   : > { %1151 = vmatprep.subr.bf16.mxu0 %v1150_v16  ;;  %v579_v19 = vsel %vm577_vm7, %v1307_v14, %v1297_v3  ;;  %v588_v21 = vsel %vm577_vm7, %v1308_v13, %v1302_v8  ;;  %v580_v22 = vsel %vm577_vm7, %v1298_v2, %v1307_v14  ;;  %v589_v23 = vsel %vm577_vm7, %v1303_v7, %v1308_v13 }
  0xb2   : > { %v1316_v24 = vpop.permute.xlu0 %1315  ;;  %v1152_v25 = vpack.c.bf16 %v588_v21, %v579_v19  ;;  %v1180_v26 = vpack.c.bf16 %v589_v23, %v580_v22  ;;  %v603_v32 = vsel %vm602_vm8, %v1312_v18, %v1313_v17  ;;  %v909_v8 = vmul.f32 %v1619_v49, %v401_v61 }
  0xb3   : > { %v1318_v27 = vunpack.i.h.bf16 %v1316_v24  ;;  %v1317_v28 = vunpack.i.l.bf16 %v1316_v24  ;;  %v1321_v29 = vpop.permute.xlu1 %1320  ;;  %v910_v13 = vmul.f32 %v1624_v52, %v402_v1 }
  0xb4   : > { %v1323_v30 = vunpack.i.h.bf16 %v1321_v29  ;;  %v1322_v31 = vunpack.i.l.bf16 %v1321_v29  ;;  %1153 = vmatpush1.bf16.msra.mxu0 %v1152_v25  ;;  %1181 = vmatpush1.bf16.msra.mxu1 %v1180_v26 }
  0xb5   : > { %1182 = vmatprep.subr.bf16.mxu1 %v1382_v0  ;;  %v612_v33 = vsel %vm602_vm8, %v1317_v28, %v1318_v27 }
  0xb6   : > { %v1154_v34 = vpack.c.bf16 %v612_v33, %v603_v32  ;;  %v605_v35 = vsel %vm602_vm8, %v1313_v17, %v1322_v31  ;;  %v614_v36 = vsel %vm602_vm8, %v1318_v27, %v1323_v30  ;;  %v604_v37 = vsel %vm602_vm8, %v1322_v31, %v1312_v18 }
  0xb7   : > { %v1183_v38 = vpack.c.bf16 %v614_v36, %v605_v35  ;;  %v613_v0 = vsel %vm602_vm8, %v1323_v30, %v1317_v28 }
  0xb8   : > { %1155 = vmatprep.subr.bf16.mxu0 %v1154_v34  ;;  %v1156_v39 = vpack.c.bf16 %v613_v0, %v604_v37 }
  0xb9   : > { %1184 = vmatpush1.bf16.msra.mxu1 %v1183_v38 }
  0xba   : > { %1157 = vmatpush1.bf16.msra.mxu0 %v1156_v39 }
  0xbc   : > { %862 = vmatmul.mubr.f32.vlgmr.msra.gmra.mrb[0].mxu1 %v386_v40 }
  0xbd   : > { %773 = vmatmul.mubr.f32.vlgmr.msra.gmra.mrb[0].mxu0 %v386_v40  ;;  %1108 = vmatprep.mubr.msk.f32.mxu1 %vm695_vm0, %v389_v41 }
  0xbe   : > { %1104 = vmatprep.mubr.msk.f32.mxu0 %vm695_vm0, %v389_v41 }
  0xc0   : > { %867 = vmatmul.mubr.f32.gmra.mrb[2].mxu1 %v388_v20 }
  0xc1   : > { %779 = vmatmul.mubr.f32.gmra.mrb[2].mxu0 %v388_v20  ;;  %1109 = vmatprep.mubr.msk.f32.mxu1 %vm695_vm0, %v391_v42 }
  0xc2   : > { %1105 = vmatprep.mubr.msk.f32.mxu0 %vm695_vm0, %v391_v42 }
  0xc3   : > { %v678_v50 = vpop.permute.xlu0 %677 }
  0xc4   : > { %872 = vmatmul.mubr.f32.gmra.mrb[4].mxu1 %v390_v43  ;;  %v683_v6 = vpop.permute.xlu1 %682 }
  0xc5   : > { %785 = vmatmul.mubr.f32.gmra.mrb[4].mxu0 %v390_v43  ;;  %1110 = vmatprep.mubr.msk.f32.mxu1 %vm695_vm0, %v393_v44 }
  0xc6   : > { %1106 = vmatprep.mubr.msk.f32.mxu0 %vm695_vm0, %v393_v44 }
  0xc8   : > { %877 = vmatmul.mubr.f32.gmra.mrb[6].mxu1 %v392_v45  ;;  %v688_v31 = vpop.permute.xlu1 %687 }
  0xc9   : > { %791 = vmatmul.mubr.f32.gmra.mrb[6].mxu0 %v392_v45 }
 0x18f   : > { %v863_v54 = vpop.f32.mrb[0].mxu1 }
 0x190   : > { %v864_v57 = vadd.f32 %v863_v54, %v678_v50  ;;  %v774_v58 = vpop.f32.mrb[0].mxu0  ;;  %v865_v60 = vpop.f32.mrb[1].mxu1 }
 0x191   : > { %v775_v62 = vadd.f32 %v774_v58, %v678_v50  ;;  %v776_v63 = vpop.f32.mrb[1].mxu0 }
 0x192   : > { %v890_v2 = vadd.f32 %v887_v53, %v864_v57  ;;  %v777_v3 = vadd.f32 %v776_v63, %v678_v50 }
 0x193   : > { %v888_v5 = vadd.f32 %v885_v55, %v775_v62  ;;  %v868_v7 = vpop.f32.mrb[2].mxu1 }
 0x194   : > { %v1113_v9 = vmul.f32 -1.442695, %v890_v2  ;;  %v889_v10 = vadd.f32 %v886_v59, %v777_v3  ;;  %v869_v11 = vadd.f32 %v868_v7, %v683_v6  ;;  %v780_v12 = vpop.f32.mrb[2].mxu0  ;;  %v870_v14 = vpop.f32.mrb[3].mxu1  ;;  %v406_v2 = vld [vmem:[%s1670_s6 + $0x10] sm:$0xff] }
 0x195   : > { %v1111_v15 = vmul.f32 -1.442695, %v888_v5  ;;  %v781_v16 = vadd.f32 %v780_v12, %v683_v6  ;;  %v782_v17 = vpop.f32.mrb[3].mxu0  ;;  %v404_v5 = vld [vmem:[%s1670_s6] sm:$0xff]  ;;  %v693_v7 = vpop.permute.xlu0 %692 }
 0x196   : > { %1326 = vpow2.f32 %v1113_v9  ;;  %v1112_v18 = vmul.f32 -1.442695, %v889_v10  ;;  %v914_v19 = vadd.f32 %v911_v4, %v869_v11  ;;  %v783_v21 = vadd.f32 %v782_v17, %v683_v6 }
 0x197   : > { %1328 = vpow2.f32 %v1111_v15  ;;  %v912_v22 = vadd.f32 %v909_v8, %v781_v16  ;;  %v873_v23 = vpop.f32.mrb[4].mxu1  ;;  %v405_v8 = vld [vmem:[%s1670_s6 + $0x8] sm:$0xff] }
 0x198   : > { %1330 = vpow2.f32 %v1112_v18  ;;  %v1116_v24 = vmul.f32 -1.442695, %v914_v19  ;;  %v913_v25 = vadd.f32 %v910_v13, %v783_v21  ;;  %v786_v26 = vpop.f32.mrb[4].mxu0  ;;  %v875_v27 = vpop.f32.mrb[5].mxu1  ;;  %v874_v33 = vadd.f32 %v873_v23, %v688_v31 }
 0x199   : > { %v1114_v28 = vmul.f32 -1.442695, %v912_v22  ;;  %v788_v29 = vpop.f32.mrb[5].mxu0  ;;  %v787_v36 = vadd.f32 %v786_v26, %v688_v31 }
 0x19a   : > { %1332 = vpow2.f32 %v1116_v24  ;;  %v1115_v30 = vmul.f32 -1.442695, %v913_v25  ;;  %v789_v38 = vadd.f32 %v788_v29, %v688_v31 }
 0x19b   : > { %1334 = vpow2.f32 %v1114_v28  ;;  %v878_v32 = vpop.f32.mrb[6].mxu1 }
 0x19c   : > { %1336 = vpow2.f32 %v1115_v30  ;;  %v792_v34 = vpop.f32.mrb[6].mxu0  ;;  %v880_v35 = vpop.f32.mrb[7].mxu1  ;;  %v879_v9 = vadd.f32 %v878_v32, %v693_v7 }
 0x19d   : > { %v794_v37 = vpop.f32.mrb[7].mxu0  ;;  %1338 = vtanh.f32 %v874_v33  ;;  %v793_v12 = vadd.f32 %v792_v34, %v693_v7 }
 0x19e   : > { %1340 = vtanh.f32 %v787_v36  ;;  %v795_v14 = vadd.f32 %v794_v37, %v693_v7 }
 0x19f   : > { %1342 = vtanh.f32 %v789_v38 }
 0x1a0   : > { %v1327_v0 = vpop.eup %1326 }
 0x1a1   : > { %v1329_v39 = vpop.eup %1328  ;;  %v902_v40 = vadd.f32 1.0, %v1327_v0 }
 0x1a2   : > { %v1331_v41 = vpop.eup %1330  ;;  %v900_v20 = vadd.f32 1.0, %v1329_v39 }
 0x1a3   : > { %1344 = vrcp.f32 %v902_v40  ;;  %v901_v42 = vadd.f32 1.0, %v1331_v41 }
 0x1a4   : > { %v1333_v43 = vpop.eup %1332  ;;  %1346 = vrcp.f32 %v900_v20 }
 0x1a5   : > { %v1335_v44 = vpop.eup %1334  ;;  %1348 = vrcp.f32 %v901_v42  ;;  %v926_v45 = vadd.f32 1.0, %v1333_v43 }
 0x1a6   : > { %v1337_v46 = vpop.eup %1336  ;;  %v924_v48 = vadd.f32 1.0, %v1335_v44 }
 0x1a7   : > { %1350 = vrcp.f32 %v926_v45  ;;  %v925_v50 = vadd.f32 1.0, %v1337_v46  ;;  %v1339_v51 = vpop.eup %1338 }
 0x1a8   : > { %1352 = vrcp.f32 %v924_v48  ;;  %v1341_v53 = vpop.eup %1340 }
 0x1a9   : > { %1354 = vrcp.f32 %v925_v50  ;;  %v1343_v54 = vpop.eup %1342 }
 0x1ad   : > { %v1345_v55 = vpop.eup %1344 }
 0x1ae   : > { %v1347_v56 = vpop.eup %1346  ;;  %v941_v57 = vmul.f32 %v1345_v55, %v1339_v51 }
 0x1af   : > { %v1349_v58 = vpop.eup %1348  ;;  %v939_v59 = vmul.f32 %v1347_v56, %v1341_v53 }
 0x1b0   : > { %v940_v60 = vmul.f32 %v1349_v58, %v1343_v54 }
 0x1b1   : > { %v1351_v61 = vpop.eup %1350 }
 0x1b2   : > { %v1353_v62 = vpop.eup %1352  ;;  %v935_v63 = vmul.f32 %v1351_v61, %v1614_v47 }
 0x1b3   : > { %v1355_v1 = vpop.eup %1354  ;;  %v933_v3 = vmul.f32 %v1353_v62, %v1619_v49 }
 0x1b4   : > { %v944_v4 = vadd.f32 %v941_v57, %v935_v63  ;;  %v934_v6 = vmul.f32 %v1355_v1, %v1624_v52 }
 0x1b5   : > { %v942_v47 = vadd.f32 %v939_v59, %v933_v3 }
 0x1b6   : > { %v947_v10 = vmul.f32 %v944_v4, %v406_v2  ;;  %980 = vst [vmem:[%s385_s29 + $0x10] sm:$0xff] %v944_v4  ;;  %v943_v11 = vadd.f32 %v940_v60, %v934_v6 }
 0x1b7   : > { %v945_v13 = vmul.f32 %v942_v47, %v404_v5  ;;  %978 = vst [vmem:[%s385_s29] sm:$0xff] %v942_v47 }
 0x1b8   : > { %v950_v49 = vadd.f32 %v947_v10, %v879_v9  ;;  %v946_v15 = vmul.f32 %v943_v11, %v405_v8  ;;  %979 = vst [vmem:[%s385_s29 + $0x8] sm:$0xff] %v943_v11 }
 0x1b9   : > { %v948_v16 = vadd.f32 %v945_v13, %v793_v12 }
 0x1ba   : > { %v1119_v17 = vmul.f32 -1.442695, %v950_v49  ;;  %v949_v52 = vadd.f32 %v946_v15, %v795_v14 }
 0x1bb   : > { %v1117_v18 = vmul.f32 -1.442695, %v948_v16 }
 0x1bc   : > { %1356 = vpow2.f32 %v1119_v17  ;;  %v1118_v19 = vmul.f32 -1.442695, %v949_v52 }
 0x1bd   : > { %1358 = vpow2.f32 %v1117_v18 }
 0x1be   : > { %1360 = vpow2.f32 %v1118_v19 }
 0x1bf   : > { %1362 = vtanh.f32 %v944_v4 }
 0x1c0   : > { %1364 = vtanh.f32 %v942_v47 }
 0x1c1   : > { %1366 = vtanh.f32 %v943_v11 }
 0x1c6   : > { %v1357_v21 = vpop.eup %1356 }
 0x1c7   : > { %v1359_v22 = vpop.eup %1358  ;;  %v962_v23 = vadd.f32 1.0, %v1357_v21 }
 0x1c8   : > { %v1361_v24 = vpop.eup %1360  ;;  %v960_v25 = vadd.f32 1.0, %v1359_v22 }
 0x1c9   : > { %1368 = vrcp.f32 %v962_v23  ;;  %v961_v26 = vadd.f32 1.0, %v1361_v24  ;;  %v1363_v27 = vpop.eup %1362 }
 0x1ca   : > { %1370 = vrcp.f32 %v960_v25  ;;  %v1365_v28 = vpop.eup %1364 }
 0x1cb   : > { %1372 = vrcp.f32 %v961_v26  ;;  %v1367_v29 = vpop.eup %1366 }
 0x1d3   : > { %v1369_v30 = vpop.eup %1368 }
 0x1d4   : > { %v1371_v31 = vpop.eup %1370  ;;  %v974_v32 = vmul.f32 %v1369_v30, %v1363_v27 }
 0x1d5   : > { %v1373_v33 = vpop.eup %1372  ;;  %v972_v34 = vmul.f32 %v1371_v31, %v1365_v28 }
 0x1d6   : > { %977 = vst [vmem:[%s380_s19 + $0x10] sm:$0xff] %v974_v32  ;;  %v973_v35 = vmul.f32 %v1373_v33, %v1367_v29 }
 0x1d7   : > { %975 = vst [vmem:[%s380_s19] sm:$0xff] %v972_v34 }
 0x1d8   : > { %976 = vst [vmem:[%s380_s19 + $0x8] sm:$0xff] %v973_v35 }
 0x1d9 PF: > { %s20_s30 = sadd.s32 1, %s1380_s30  }
 0x1da   : > { %p17_p4 = scmp.ge.s32.totalorder %s20_s30, 4  }
 0x1dc   :  { %19 = sbr.rel (!%p17_p4) target bundleno = 1 (0x1), region = 100 }

</bundles_post_ra>
